<compile_context>
chip_gen: v7x
topology: tpu7x:2x2x1
jax: 0.10.0
libtpu: 0.0.40
codegen_flags: <defaults>
</compile_context>

<pallas_src>
import math
import jax
import jax.numpy as jnp
from jax.experimental import pallas as pl
from jax.experimental.pallas import tpu as pltpu


# -----------------------------------------------------------------------------
# Kernels
# -----------------------------------------------------------------------------

def _qgemm_kernel(g_ref, w_ref, o_ref):
    # g_ref : (B, K)    outer-product features (f32 or bf16), K = I*I, lane-dense
    # w_ref : (K, TO)   weight tile, MXU-native layout (K on sublanes)
    # o_ref : (B, TO)   f32 output tile, out-features on the lane axis
    o_ref[...] = jnp.dot(g_ref[...], w_ref[...],
                         preferred_element_type=jnp.float32).astype(o_ref.dtype)


def _qgemm_int8_kernel(g_ref, w_ref, s_ref, o_ref):
    # w_ref : (K, TO) int8 weights; s_ref : (1, TO) per-output-row dequant scale.
    # The VPU int8->f32 cast is free slack on a mem-bound kernel, and the
    # per-column scale is applied once to the small (B, TO) result.
    w = w_ref[...].astype(jnp.float32)
    y = jnp.dot(g_ref[...], w, preferred_element_type=jnp.float32)
    o_ref[...] = (y * s_ref[...]).astype(o_ref.dtype)


# -----------------------------------------------------------------------------
# One-time weight preparation (keep OUT of the per-call hot path)
# -----------------------------------------------------------------------------

def prepare_quadratic_weight(weight_a, weight_format="f32"):
    """Repack weight_a (O, I, I) -> MXU-native (K=I*I, O) slab, once.

    Doing the cast/transpose here (parameter-creation time) instead of inside
    the forward wrapper avoids paying an extra full HBM read+write pass over W
    every call -- which would throw away most of the bandwidth win.

      "f32"  : exact
      "bf16" : 2x less weight HBM traffic (all generations), f32 accumulate
      "int8" : 4x less weight HBM traffic, per-output-row scale applied in-kernel
    Returns (w_kn, scale_row); scale_row is None except for "int8".
    """
    O, I, I2 = weight_a.shape
    assert I == I2
    K = I * I
    w_flat = weight_a.reshape(O, K).astype(jnp.float32)
    if weight_format == "f32":
        return w_flat.T, None                                  # (K, O)
    if weight_format == "bf16":
        return w_flat.T.astype(jnp.bfloat16), None
    if weight_format == "int8":
        absmax = jnp.max(jnp.abs(w_flat), axis=1)              # (O,)
        scale = jnp.maximum(absmax, 1e-12) / 127.0
        wq = jnp.clip(jnp.round(w_flat / scale[:, None]), -127, 127).astype(jnp.int8)
        return wq.T, scale.reshape(1, O).astype(jnp.float32)   # (K, O), (1, O)
    # TODO(synk): fp8 (float8_e4m3fn) weight stream for v7x (same per-row-scale
    # structure as int8); not exercised here.
    raise ValueError(f"unknown weight_format: {weight_format}")


# -----------------------------------------------------------------------------
# Per-chip VMEM-aware tiling
# -----------------------------------------------------------------------------

def _vmem_capacity_bytes():
    try:
        return int(pltpu.get_tpu_info().vmem_capacity_bytes)
    except Exception:
        return 64 * 1024 * 1024   # conservative fallback (v7x per-core VMEM)


def _auto_block_out(O, K, B, w_itemsize, g_itemsize, out_itemsize, vmem_budget):
    fixed = 2 * B * K * g_itemsize                        # resident G (double-buffered)
    per_bo = 2 * (K * w_itemsize + B * out_itemsize)      # W + out tiles per out-feature
    if O % 128 != 0:
        return O        # small / irregular out_features: single full-width tile
    cands = [c for c in range(O, 127, -128) if O % c == 0]
    if O >= 256:
        # Guarantee >= 2 grid steps so ("parallel",) can shard the weight stream
        # across v7x's two TensorCores (no effect on single-TC v5e/v6e).
        halved = [c for c in cands if c <= O // 2]
        cands = halved if halved else cands
    for c in cands:
        if fixed + c * per_bo <= vmem_budget:
            return c
    # TODO(synk): for very large in_features (K = I*I), add a K-reduction grid
    # axis (f32 VMEM accumulator + pl.when init/finalize) instead of shrinking
    # block_out below 128 -- needed earliest on v7x's 64 MiB VMEM.
    return cands[-1]


# -----------------------------------------------------------------------------
# Forward (hot path)
# -----------------------------------------------------------------------------

def dales_general_quadratic_forward(x, w_kn, scale_row=None, *, block_out=None):
    """y[b, o] = x[b, :] @ weight_a[o] @ x[b, :]   via one lane-dense GEMM.

    x         : (B, in_features)
    w_kn      : (in_features**2, out_features)  from prepare_quadratic_weight
    scale_row : (1, out_features) per-row dequant scale (int8 weights) or None
    Output    : (B, out_features) float32, matching F.bilinear(x, x, weight_a).
    """
    B, I = x.shape
    K, O = w_kn.shape
    assert K == I * I, "w_kn must come from prepare_quadratic_weight (K = I*I)"

    # Outer-product features, formed in f32 so x_i*x_j is not quantized twice;
    # cast afterwards only when the weight stream is bf16.
    xf = x.astype(jnp.float32)
    g = (xf[:, :, None] * xf[:, None, :]).reshape(B, K)
    if w_kn.dtype == jnp.bfloat16:
        g = g.astype(jnp.bfloat16)
    # TODO(synk): for large B, build G inside the kernel from a (B, I) x tile
    # instead of round-tripping ~2*B*K bytes through HBM (negligible at small B).

    w_itemsize = jnp.dtype(w_kn.dtype).itemsize
    g_itemsize = jnp.dtype(g.dtype).itemsize
    out_itemsize = 4  # f32 output

    vmem_budget = int(0.8 * _vmem_capacity_bytes())       # ~20% headroom, per chip
    if block_out is None:
        block_out = _auto_block_out(O, K, B, w_itemsize, g_itemsize,
                                    out_itemsize, vmem_budget)
    assert O % block_out == 0
    assert block_out == O or block_out % 128 == 0, (
        "block_out must equal out_features or be a multiple of 128 "
        "(lane-dense weight/output tiles)")
    grid = (O // block_out,)

    vmem_needed = (2 * B * K * g_itemsize
                   + 2 * block_out * (K * w_itemsize + B * out_itemsize)
                   + 2 * block_out * 4)
    vmem_limit = int(min(max(int(1.25 * vmem_needed), 32 * 1024 * 1024),
                         vmem_budget))

    in_specs = [
        pl.BlockSpec((B, K), lambda o: (0, 0)),             # G: resident (const map)
        pl.BlockSpec((K, block_out), lambda o: (0, o)),     # W tile: streamed
    ]
    args = [g, w_kn]
    kernel = _qgemm_kernel
    if scale_row is not None:
        in_specs.append(pl.BlockSpec((1, block_out), lambda o: (0, o)))
        args.append(scale_row)
        kernel = _qgemm_int8_kernel

    bytes_accessed = (B * K * g_itemsize + K * O * w_itemsize + B * O * out_itemsize
                      + (O * 4 if scale_row is not None else 0))

    return pl.pallas_call(
        kernel,
        out_shape=jax.ShapeDtypeStruct((B, O), jnp.float32),
        grid_spec=pltpu.PrefetchScalarGridSpec(
            num_scalar_prefetch=0,
            grid=grid,
            in_specs=in_specs,
            out_specs=pl.BlockSpec((B, block_out), lambda o: (0, o)),
        ),
        compiler_params=pltpu.CompilerParams(
            dimension_semantics=("parallel",),
            vmem_limit_bytes=vmem_limit),
        cost_estimate=pl.CostEstimate(
            flops=2 * B * O * K,
            transcendentals=0,
            bytes_accessed=bytes_accessed),
    )(*args)


# -----------------------------------------------------------------------------
# Parameter init (replica of Dales_General_quadratic.reset_parameters)
# -----------------------------------------------------------------------------

def init_weight_a(key, in_features, out_features, EI_distribution):
    bound = 1.0 / math.sqrt(in_features)
    wa = jax.random.uniform(key, (out_features, in_features, in_features),
                            dtype=jnp.float32, minval=-bound, maxval=bound)
    # kappa_matrix = -1 everywhere, except rows/cols where EI_distribution == 0 are +1
    is_zero = (EI_distribution == 0)
    kappa = jnp.where(is_zero[:, None] | is_zero[None, :],
                      jnp.float32(1.0), jnp.float32(-1.0))
    wa = jnp.abs(wa + jnp.transpose(wa, (0, 2, 1))) * kappa / 2.0
    return wa


if __name__ == "__main__":
    B = 8
    IN_FEATURES = 32
    OUT_FEATURES = 256     # large enough to exercise the tiled / 2-step grid path

    key = jax.random.PRNGKey(0)
    k_w, k_x = jax.random.split(key)

    EI_distribution = jnp.arange(IN_FEATURES, dtype=jnp.int32) % 2
    weight_a = init_weight_a(k_w, IN_FEATURES, OUT_FEATURES, EI_distribution)
    x = jax.random.normal(k_x, (B, IN_FEATURES), dtype=jnp.float32)

    # Pure-JAX reference of F.bilinear(x, x, weight_a) at full f32 precision.
    y_ref = jnp.einsum('bi,oij,bj->bo', x, weight_a, x,
                       precision=jax.lax.Precision.HIGHEST)

    # Exact f32 path (default).
    w_f32, _ = prepare_quadratic_weight(weight_a, "f32")
    y = jax.block_until_ready(dales_general_quadratic_forward(x, w_f32))
    assert y.shape == (B, OUT_FEATURES)
    assert jnp.allclose(y, y_ref, atol=1e-4, rtol=1e-4), "f32 path mismatch vs reference"

    # Bandwidth-optimized int8 weight stream (4x less HBM traffic on the
    # dominant W stream; per-output-row scale dequantized in-kernel).
    w_i8, s_i8 = prepare_quadratic_weight(weight_a, "int8")
    y_q = jax.block_until_ready(dales_general_quadratic_forward(x, w_i8, s_i8))
    rel = jnp.linalg.norm(y_q - y_ref) / jnp.linalg.norm(y_ref)
    assert float(rel) < 2e-2, f"int8 path relative error too large: {float(rel)}"

    print("KERNEL_OK")
</pallas_src>

<mosaic_0001>
module attributes {stable_mosaic.version = 11 : i64} {
  func.func @_qgemm_kernel(%arg0: i32, %arg1: memref<8x1024xf32, #tpu.memory_space<vmem>>, %arg2: memref<1024x128xf32, #tpu.memory_space<vmem>>, %arg3: memref<8x128xf32, #tpu.memory_space<vmem>>) attributes {dimension_semantics = [#tpu.dimension_semantics<parallel>], iteration_bounds = array<i64: 2>, scalar_prefetch = 0 : i64, scratch_operands = 0 : i64, tpu.core_type = #tpu.core_type<tc>, window_params = [{pipeline_mode = #tpu.pipeline_mode<synchronous>, transform_indices = @transform_0, window_bounds = array<i64: 8, 1024>}, {transform_indices = @transform_1, window_bounds = array<i64: 1024, 128>}, {transform_indices = @transform_2, window_bounds = array<i64: 8, 128>}]} {
    %c0 = arith.constant 0 : index
    %c0_0 = arith.constant 0 : index
    %0 = vector.load %arg1[%c0, %c0_0] : memref<8x1024xf32, #tpu.memory_space<vmem>>, vector<8x1024xf32>
    %c0_1 = arith.constant 0 : index
    %c0_2 = arith.constant 0 : index
    %1 = vector.load %arg2[%c0_1, %c0_2] : memref<1024x128xf32, #tpu.memory_space<vmem>>, vector<1024x128xf32>
    %cst = arith.constant dense<0.000000e+00> : vector<8x128xf32>
    %2 = tpu.matmul %0, %1, %cst {dimension_numbers = #tpu.dot_dimension_numbers<[1], [0], [0], [1], [0, 0, 1, 1], [], []>} : vector<8x1024xf32>, vector<1024x128xf32>, vector<8x128xf32> -> vector<8x128xf32>
    %c0_3 = arith.constant 0 : index
    %c0_4 = arith.constant 0 : index
    %3 = vector.load %arg3[%c0_3, %c0_4] : memref<8x128xf32, #tpu.memory_space<vmem>>, vector<8x128xf32>
    tpu.vector_store %arg3[%c0_3, %c0_4], %2 {strides = array<i32>} : memref<8x128xf32, #tpu.memory_space<vmem>>, vector<8x128xf32>,
    return
  }
  func.func @transform_0(%arg0: i32) -> (i32, i32) {
    %c0_i32 = arith.constant 0 : i32
    %c0_i32_0 = arith.constant 0 : i32
    %c0_i32_1 = arith.constant 0 : i32
    return %c0_i32, %c0_i32_0 : i32, i32
  }
  func.func @transform_1(%arg0: i32) -> (i32, i32) {
    %c0_i32 = arith.constant 0 : i32
    %c0_i32_0 = arith.constant 0 : i32
    return %c0_i32, %arg0 : i32, i32
  }
  func.func @transform_2(%arg0: i32) -> (i32, i32) {
    %c0_i32 = arith.constant 0 : i32
    %c0_i32_0 = arith.constant 0 : i32
    return %c0_i32, %arg0 : i32, i32
  }
}

</mosaic_0001>

<bundles_post_ra>
// kernel: tpu_custom_call.1
= control target key start
LH: loop header
LB: loop body
LE: loop exit
PB: predicated region body
PF: predicated region fallthrough
CT: control target
= control target key end

     0   :  { %7 = vsyncpa [#allocation3], 0  ;;  %s1507_s0 = inlined_call_operand.hbm [shape: f32[8,1024], index: 0, kind: input, shape index: {}]   ;;  %s1508_s1 = inlined_call_operand.hbm [shape: f32[1024,256], index: 1, kind: input, shape index: {}]   ;;  %s1509_s2 = inlined_call_operand.hbm [shape: f32[8,256], index: 2, kind: output, shape index: {}]  }
   0x1   :  { %8 = vsyncpa [#allocation6], 0 }
   0x2   :  { %10 = vsyncpa [#allocation6 + $0x1], 0 }
   0x3   :  { %11 = vsyncpa [#allocation4], 0 }
   0x4   :  { %13 = vsyncpa [#allocation4 + $0x1], 0  ;;  %s1180_s9 = smov 0   ;;  %s1182_s10 = smov 0  }
   0x5   :  { %s1184_s11 = smov 0   ;;  %s1186_s12 = smov 0  }
   0x6 LB: > { %s1201_s13 = sadd.s32 4294967295, %s1157_s12   ;;  %s687_s14 = sadd.s32 4294967294, %s1157_s12   ;;  %s1157_s12 = sphi %s1186_s12, %s1534_s12   ;;  %s1153_s11 = sphi %s1184_s11, %s1533_s11   ;;  %s1149_s10 = sphi %s1182_s10, %s1532_s10   ;;  %s1145_s9 = sphi %s1180_s9, %s1531_s9  }
   0x7   : > { %s1205_s15 = sadd.s32 1, %s1157_s12   ;;  %s47_s16 = sadd.s32 1, %s1153_s11 }
   0x8   : > { %s44_s17 = ssub.s32 %s1157_s12, %s1205_s15  ;;  %p54_p0 = scmp.ne.s32.totalorder %s1153_s11, %s1149_s10 }
   0x9   : > { %p45_p1 = scmp.eq.s32.totalorder %s44_s17, 0  ;;  %p55_p2 = scmp.eq.s32.totalorder %s1157_s12, 0 }
   0xa   : > { %p60_p3 = scmp.ne.s32.totalorder %s1149_s10, %s1145_s9  ;;  %p1510_p4 = scmp.eq.s32.totalorder %s1201_s13, 0 }
   0xb   : > { %s1217_s18 = scalar_select %p45_p1, %s1153_s11, %s47_s16  }
   0xc   : > { %p1219_p5 = por %p55_p2, %p54_p0  ;;  %p1225_p6 = por %p1510_p4, %p60_p3 }
   0xd   : > { %p84_p7 = scmp.eq.s32.totalorder %s1201_s13, 1  ;;  %p90_p8 = scmp.eq.s32.totalorder %s687_s14, 1 }
   0xe   : > { %s1516_s20 = scalar_select %p1225_p6, 1, 0 }
   0xf   : > { %p688_p9 = scmp.ge.s32.totalorder %s1157_s12, 1  ;;  %p97_p10 = scmp.lt.s32.totalorder %s1157_s12, 3 }
  0x10   : > { %p1232_p11 = por %p84_p7, %p54_p0  ;;  %p1236_p12 = por %p90_p8, %p60_p3 }
  0x11   : > { %p1240_p13 = pnand %p688_p9, %p97_p10  ;;  %s1159_s24 = smov [#allocation2]  }
  0x12   : > { %s1517_s21 = scalar_select %p1232_p11, 1, 0 }
  0x13   : > { %s1518_s22 = scalar_select %p1236_p12, 1, 0 }
  0x14   : > { %s1519_s23 = scalar_select %p1240_p13, 1, 0 }
  0x15   : > { %p977_p2 = pneg %p1240_p13  ;;  %s110_s25 = sshll.u32 %s1159_s24, 4  ;;  %s111_s25 = int_to_ptr.vmem [resolvable:$true] %s110_s25 }
  0x16   : > { %p990_p4 = scmp.lt.s32.totalorder %s1157_s12, 2  ;;  %p1520_p0 = scmp.eq.s32.totalorder %s1201_s13, 0 }
  0x17   : > { %s121_s27 = sand.u32 1, %s1153_s11   ;;  %s1029_s4 = scalar_lea.hbm %s1507_s0, 1024 }
  0x18   : > { %p1250_p7 = pnand %p977_p2, %p1520_p0  ;;  %p1257_p3 = pnand %p990_p4, %p1219_p5 }
  0x19   : > { %s691_s29 = sshll.u32 %s121_s27, 10  ;;  %p1030_p8 = scmp.ne.s32.totalorder %s1507_s0, %s1029_s4 }
  0x1a   : > { %s1522_s28 = scalar_select %p1257_p3, 1, 0 }
  0x1b   : > { %p1031_p9 = pneg %p1250_p7  ;;  %p1036_p4 = scmp.lt.u32.totalorder %s1029_s4, %s1507_s0 }
  0x1d   : > { %p1032_p10 = pnand %p1031_p9, %p1030_p8 }
  0x1f   : > { %p1033_p2 = pneg %p1032_p10 }
  0x21   : > { %p1038_p5 = pnand %p1036_p4, %p1033_p2 }
  0x23   : > { %1041 = shalt.err (!%p1038_p5)
}
  0x24   : > { %s1042_s14 = scalar_lea.vmem %s111_s25, 1024  ;;  %p1050_p11 = scmp.lt.s32.totalorder %s111_s25, %s111_s25 }
  0x25   : > { %p1043_p0 = scmp.ne.s32.totalorder %s111_s25, %s1042_s14  ;;  %p1051_p6 = scmp.lt.s32.totalorder %s1042_s14, %s1042_s14 }
  0x27   : > { %p1045_p1 = pnand %p1043_p0, %p1031_p9  ;;  %p1052_p13 = por %p1051_p6, %p1050_p11 }
  0x29   : > { %p1046_p12 = pneg %p1045_p1 }
  0x2b   : > { %p1053_p3 = pnand %p1052_p13, %p1046_p12 }
  0x2d   : > { %1056 = shalt.err (!%p1053_p3)
}
  0x2e   : > { %980 = dma.hbm_to_vmem [thread:$0]  (!%p1250_p7), %s1507_s0, 1024, %s111_s25, [#allocation3]  }
  0x2f   : > { %s692_s19 = sshll.u32 %s1157_s12, 7  ;;  %s125_s24 = scalar_lea.vmem [#allocation5], %s691_s29 }
  0x30   : > { %s131_s30 = sshll.u32 %s125_s24, 4  ;;  %s1281_s5 = scalar_lea.hbm %s1508_s1, %s692_s19  ;;  %s1283_s30 = int_to_ptr.vmem [resolvable:$true] %s131_s30 }
  0x31   : > { %s1285_s26 = scalar_lea.sflag [#allocation6], %s121_s27  ;;  %s1057_s6 = scalar_lea.hbm %s1281_s5, 16384 }
  0x32   : > { %p1058_p6 = scmp.ne.s32.totalorder %s1281_s5, %s1057_s6  ;;  %p1523_p11 = scmp.ne.s32.totalorder %s1522_s28, 0 }
  0x33   : > { %s1062_s7 = scalar_lea.hbm %s1508_s1, 32768  ;;  %p1063_p7 = scmp.lt.u32.totalorder %s1281_s5, %s1508_s1 }
  0x34   : > { %p1059_p12 = pneg %p1523_p11  ;;  %p1064_p3 = scmp.lt.u32.totalorder %s1062_s7, %s1057_s6 }
  0x35   : > { %p1066_p9 = scmp.lt.u32.totalorder %s1057_s6, %s1281_s5 }
  0x36   : > { %p1060_p13 = pnand %p1059_p12, %p1058_p6  ;;  %p1065_p8 = por %p1064_p3, %p1063_p7 }
  0x38   : > { %p1061_p1 = pneg %p1060_p13  ;;  %p1067_p10 = por %p1066_p9, %p1065_p8 }
  0x3a   : > { %p1068_p2 = pnand %p1067_p10, %p1061_p1 }
  0x3c   : > { %1071 = shalt.err (!%p1068_p2)
}
  0x3d   : > { %s1072_s27 = scalar_lea.vmem %s1283_s30, 16384  ;;  %s1160_s16 = smov [#allocation5]  }
  0x3e   : > { %p1073_p4 = scmp.ne.s32.totalorder %s1283_s30, %s1072_s27  ;;  %s1077_s17 = sshll.u32 %s1160_s16, 4  ;;  %s1078_s17 = int_to_ptr.vmem [resolvable:$false] %s1077_s17 }
  0x3f   : > { %s1079_s19 = scalar_lea.vmem %s1078_s17, 32768  ;;  %p1080_p6 = scmp.lt.s32.totalorder %s1283_s30, %s1078_s17 }
  0x40   : > { %p1075_p5 = pnand %p1073_p4, %p1059_p12  ;;  %p1081_p13 = scmp.lt.s32.totalorder %s1079_s19, %s1072_s27 }
  0x42   : > { %p1076_p0 = pneg %p1075_p5  ;;  %p1082_p7 = por %p1081_p13, %p1080_p6 }
  0x44   : > { %p1083_p3 = pnand %p1082_p7, %p1076_p0 }
  0x46   : > { %1086 = shalt.err (!%p1083_p3)
}
  0x47   : > { %s1161_s24 = smov 256   ;;  %s1162_s3 = smov 128  }
  0x48   : > { %s1163_s4 = smov 8   ;;  %p1524_p12 = scmp.ne.s32.totalorder %s1519_s23, 0 }
  0x49   : > { %984 = dma.hbm_to_vmem [thread:$0]  (!%p1523_p11), %s1281_s5, 16384, %s1283_s30, %s1285_s26, %s1161_s24, %s1162_s3, %s1163_s4  }
  0x4a   : > { %143 = sbr.rel (%p1524_p12) target bundleno = 387 (0x183), region = 28  ;;  %p1525_p1 = scmp.eq.s32.totalorder (!%p1524_p12), %s1201_s13, 0 }
  0x51   : > { %1132 = dma.done.wait (%p1525_p1), [#allocation3], 1024   ;;  %p1526_p8 = pmov %p1525_p1 }
  0x52   : > { %s1320_s6 = sand.u32 1, %s1149_s10   ;;  %p1527_p11 = scmp.ne.s32.totalorder %s1516_s20, 0 }
  0x53   : > { %1134 = vsyncadd (%p1526_p8), [#allocation3], 4294966272  ;;  %s695_s25 = sshll.u32 %s1320_s6, 10  ;;  %s150_s29 = scalar_lea.sflag [#allocation6], %s1320_s6 }
  0x54   : > { %s1324_s7 = scalar_lea.vmem [#allocation5], %s695_s25 }
  0x55   : > { %1136 = dma.done.wait (%p1527_p11), %s150_s29, 16384  }
  0x56   : > { %1138 = vsyncadd (%p1527_p11), %s150_s29, 4294950912  ;;  %v198_v0 = vld [vmem:[%s1324_s7 + $0x80] sm:$0xff]  ;;  %v199_v1 = vld [vmem:[%s1324_s7 + $0x88] sm:$0xff]  ;;  %s696_s20 = sshll.u32 %s1320_s6, 3  ;;  %s698_s23 = sshll.u32 %s1201_s13, 7 }
  0x57   : > { %v230_v2 = vld [vmem:[%s1324_s7 + $0x180] sm:$0xff]  ;;  %v841_v3 = vpack.c.bf16 %v199_v1, %v198_v0  ;;  %v231_v4 = vld [vmem:[%s1324_s7 + $0x188] sm:$0xff]  ;;  %v200_v11 = vld [vmem:[%s1324_s7 + $0x90] sm:$0xff]  ;;  %s173_s28 = scalar_lea.vmem [#allocation7], %s696_s20  ;;  %s1463_s8 = scalar_lea.hbm %s1509_s2, %s698_s23 }
  0x58   : > { %v182_v5 = vld [vmem:[%s1324_s7] sm:$0xff]  ;;  %v183_v6 = vld [vmem:[%s1324_s7 + $0x8] sm:$0xff]  ;;  %v873_v7 = vpack.c.bf16 %v231_v4, %v230_v2  ;;  %v201_v13 = vld [vmem:[%s1324_s7 + $0x98] sm:$0xff]  ;;  %s605_s30 = sshll.u32 %s173_s28, 4  ;;  %s592_s14 = scalar_lea.sflag [#allocation4], %s1320_s6  ;;  %s1465_s30 = int_to_ptr.vmem [resolvable:$true] %s605_s30 }
  0x59   : > { %v843_v8 = vpack.c.bf16 %v183_v6, %v182_v5  ;;  %v214_v9 = vld [vmem:[%s1324_s7 + $0x100] sm:$0xff]  ;;  %v215_v10 = vld [vmem:[%s1324_s7 + $0x108] sm:$0xff]  ;;  %842 = vmatprep.subr.bf16.mxu0 %v841_v3  ;;  %v232_v14 = vld [vmem:[%s1324_s7 + $0x190] sm:$0xff]  ;;  %v845_v16 = vpack.c.bf16 %v201_v13, %v200_v11  ;;  %s1087_s27 = scalar_lea.vmem %s1465_s30, 128  ;;  %p1528_p10 = scmp.ne.s32.totalorder %s1517_s21, 0 }
  0x5a   : > { %v875_v12 = vpack.c.bf16 %v215_v10, %v214_v9  ;;  %v233_v15 = vld [vmem:[%s1324_s7 + $0x198] sm:$0xff]  ;;  %874 = vmatprep.subr.bf16.mxu1 %v873_v7  ;;  %v184_v18 = vld [vmem:[%s1324_s7 + $0x10] sm:$0xff]  ;;  %v202_v23 = vld [vmem:[%s1324_s7 + $0xa0] sm:$0xff]  ;;  %p1088_p9 = scmp.ne.s32.totalorder %s1465_s30, %s1087_s27  ;;  %s1164_s13 = smov [#allocation7]  }
  0x5b   : > { %844 = vmatpush3.bf16.msra.mxu0 %v843_v8  ;;  %v877_v17 = vpack.c.bf16 %v233_v15, %v232_v14  ;;  %v185_v19 = vld [vmem:[%s1324_s7 + $0x18] sm:$0xff]  ;;  %v216_v20 = vld [vmem:[%s1324_s7 + $0x110] sm:$0xff]  ;;  %v203_v24 = vld [vmem:[%s1324_s7 + $0xa8] sm:$0xff]  ;;  %s1091_s16 = sshll.u32 %s1164_s13, 4  ;;  %s1092_s16 = int_to_ptr.vmem [resolvable:$false] %s1091_s16 }
  0x5c   : > { %876 = vmatpush3.bf16.msra.mxu1 %v875_v12  ;;  %v847_v21 = vpack.c.bf16 %v185_v19, %v184_v18  ;;  %v217_v22 = vld [vmem:[%s1324_s7 + $0x118] sm:$0xff]  ;;  %846 = vmatprep.subr.bf16.mxu0 %v845_v16  ;;  %v849_v26 = vpack.c.bf16 %v203_v24, %v202_v23  ;;  %v234_v27 = vld [vmem:[%s1324_s7 + $0x1a0] sm:$0xff]  ;;  %v235_v28 = vld [vmem:[%s1324_s7 + $0x1a8] sm:$0xff]  ;;  %p1089_p2 = pnand %p1088_p9, %p1528_p10  ;;  %s1093_s17 = scalar_lea.vmem %s1092_s16, 256 }
  0x5d   : > { %878 = vmatprep.subr.bf16.mxu1 %v877_v17  ;;  %v879_v25 = vpack.c.bf16 %v217_v22, %v216_v20  ;;  %v186_v29 = vld [vmem:[%s1324_s7 + $0x20] sm:$0xff]  ;;  %v881_v30 = vpack.c.bf16 %v235_v28, %v234_v27  ;;  %v187_v31 = vld [vmem:[%s1324_s7 + $0x28] sm:$0xff]  ;;  %v204_v35 = vld [vmem:[%s1324_s7 + $0xb0] sm:$0xff]  ;;  %p1094_p5 = scmp.lt.s32.totalorder %s1465_s30, %s1092_s16  ;;  %p1095_p0 = scmp.lt.s32.totalorder %s1093_s17, %s1087_s27 }
  0x5e   : > { %v218_v32 = vld [vmem:[%s1324_s7 + $0x120] sm:$0xff]  ;;  %v219_v33 = vld [vmem:[%s1324_s7 + $0x128] sm:$0xff]  ;;  %v851_v34 = vpack.c.bf16 %v187_v31, %v186_v29  ;;  %v205_v36 = vld [vmem:[%s1324_s7 + $0xb8] sm:$0xff]  ;;  %p1090_p4 = pneg %p1089_p2 }
  0x5f   : > { %848 = vmatpush3.bf16.msra.mxu0 %v847_v21  ;;  %v236_v37 = vld [vmem:[%s1324_s7 + $0x1b0] sm:$0xff]  ;;  %v883_v38 = vpack.c.bf16 %v219_v33, %v218_v32  ;;  %v853_v39 = vpack.c.bf16 %v205_v36, %v204_v35  ;;  %v237_v40 = vld [vmem:[%s1324_s7 + $0x1b8] sm:$0xff]  ;;  %v206_v46 = vld [vmem:[%s1324_s7 + $0xc0] sm:$0xff]  ;;  %p1096_p6 = por %p1095_p0, %p1094_p5 }
  0x60   : > { %880 = vmatpush3.bf16.msra.mxu1 %v879_v25  ;;  %850 = vmatprep.subr.bf16.mxu0 %v849_v26  ;;  %v188_v41 = vld [vmem:[%s1324_s7 + $0x30] sm:$0xff]  ;;  %v189_v42 = vld [vmem:[%s1324_s7 + $0x38] sm:$0xff]  ;;  %v885_v43 = vpack.c.bf16 %v237_v40, %v236_v37  ;;  %v207_v47 = vld [vmem:[%s1324_s7 + $0xc8] sm:$0xff] }
  0x61   : > { %882 = vmatprep.subr.bf16.mxu1 %v881_v30  ;;  %v220_v44 = vld [vmem:[%s1324_s7 + $0x130] sm:$0xff]  ;;  %v221_v45 = vld [vmem:[%s1324_s7 + $0x138] sm:$0xff]  ;;  %v238_v48 = vld [vmem:[%s1324_s7 + $0x1c0] sm:$0xff]  ;;  %v855_v50 = vpack.c.bf16 %v189_v42, %v188_v41  ;;  %v857_v52 = vpack.c.bf16 %v207_v47, %v206_v46  ;;  %p1097_p13 = pnand %p1096_p6, %p1090_p4 }
  0x62   : > { %v239_v49 = vld [vmem:[%s1324_s7 + $0x1c8] sm:$0xff]  ;;  %v887_v51 = vpack.c.bf16 %v221_v45, %v220_v44  ;;  %v190_v53 = vld [vmem:[%s1324_s7 + $0x40] sm:$0xff]  ;;  %v208_v58 = vld [vmem:[%s1324_s7 + $0xd0] sm:$0xff] }
  0x63   : > { %852 = vmatpush3.bf16.msra.mxu0 %v851_v34  ;;  %v191_v54 = vld [vmem:[%s1324_s7 + $0x48] sm:$0xff]  ;;  %v222_v55 = vld [vmem:[%s1324_s7 + $0x140] sm:$0xff]  ;;  %v889_v56 = vpack.c.bf16 %v239_v49, %v238_v48  ;;  %v209_v59 = vld [vmem:[%s1324_s7 + $0xd8] sm:$0xff] }
  0x64   : > { %884 = vmatpush3.bf16.msra.mxu1 %v883_v38  ;;  %854 = vmatprep.subr.bf16.mxu0 %v853_v39  ;;  %v223_v57 = vld [vmem:[%s1324_s7 + $0x148] sm:$0xff]  ;;  %v240_v60 = vld [vmem:[%s1324_s7 + $0x1d0] sm:$0xff]  ;;  %v241_v61 = vld [vmem:[%s1324_s7 + $0x1d8] sm:$0xff]  ;;  %v859_v62 = vpack.c.bf16 %v191_v54, %v190_v53  ;;  %v861_v0 = vpack.c.bf16 %v209_v59, %v208_v58 }
  0x65   : > { %886 = vmatprep.subr.bf16.mxu1 %v885_v43  ;;  %v891_v63 = vpack.c.bf16 %v223_v57, %v222_v55  ;;  %v192_v1 = vld [vmem:[%s1324_s7 + $0x50] sm:$0xff]  ;;  %v193_v2 = vld [vmem:[%s1324_s7 + $0x58] sm:$0xff]  ;;  %v893_v4 = vpack.c.bf16 %v241_v61, %v240_v60  ;;  %v210_v6 = vld [vmem:[%s1324_s7 + $0xe0] sm:$0xff] }
  0x66   : > { %v224_v3 = vld [vmem:[%s1324_s7 + $0x150] sm:$0xff]  ;;  %v225_v5 = vld [vmem:[%s1324_s7 + $0x158] sm:$0xff]  ;;  %v211_v7 = vld [vmem:[%s1324_s7 + $0xe8] sm:$0xff]  ;;  %v863_v10 = vpack.c.bf16 %v193_v2, %v192_v1 }
  0x67   : > { %856 = vmatpush3.bf16.msra.mxu0 %v855_v50  ;;  %v242_v8 = vld [vmem:[%s1324_s7 + $0x1e0] sm:$0xff]  ;;  %v243_v9 = vld [vmem:[%s1324_s7 + $0x1e8] sm:$0xff]  ;;  %v895_v13 = vpack.c.bf16 %v225_v5, %v224_v3  ;;  %v865_v14 = vpack.c.bf16 %v211_v7, %v210_v6  ;;  %v177_v17 = vld [vmem:[#allocation2 + $0x18] sm:$0xff] }
  0x68   : > { %888 = vmatpush3.bf16.msra.mxu1 %v887_v51  ;;  %858 = vmatprep.subr.bf16.mxu0 %v857_v52  ;;  %v194_v11 = vld [vmem:[%s1324_s7 + $0x60] sm:$0xff]  ;;  %v195_v12 = vld [vmem:[%s1324_s7 + $0x68] sm:$0xff]  ;;  %v897_v18 = vpack.c.bf16 %v243_v9, %v242_v8  ;;  %v212_v20 = vld [vmem:[%s1324_s7 + $0xf0] sm:$0xff] }
  0x69   : > { %890 = vmatprep.subr.bf16.mxu1 %v889_v56  ;;  %v226_v15 = vld [vmem:[%s1324_s7 + $0x160] sm:$0xff]  ;;  %v175_v16 = vld [vmem:[#allocation2 + $0x8] sm:$0xff]  ;;  %v213_v21 = vld [vmem:[%s1324_s7 + $0xf8] sm:$0xff]  ;;  %444 = vmatprep.mubr.f32.mxu1 %v177_v17  ;;  %v867_v24 = vpack.c.bf16 %v195_v12, %v194_v11 }
  0x6a   : > { %v227_v19 = vld [vmem:[%s1324_s7 + $0x168] sm:$0xff]  ;;  %374 = vmatprep.mubr.f32.mxu0 %v175_v16  ;;  %v244_v22 = vld [vmem:[%s1324_s7 + $0x1f0] sm:$0xff]  ;;  %v245_v23 = vld [vmem:[%s1324_s7 + $0x1f8] sm:$0xff]  ;;  %v869_v26 = vpack.c.bf16 %v213_v21, %v212_v20 }
  0x6b   : > { %860 = vmatpush3.bf16.msra.mxu0 %v859_v62  ;;  %v899_v25 = vpack.c.bf16 %v227_v19, %v226_v15  ;;  %v196_v27 = vld [vmem:[%s1324_s7 + $0x70] sm:$0xff]  ;;  %v197_v28 = vld [vmem:[%s1324_s7 + $0x78] sm:$0xff]  ;;  %v901_v30 = vpack.c.bf16 %v245_v23, %v244_v22  ;;  %v262_v32 = vld [vmem:[%s1324_s7 + $0x280] sm:$0xff] }
  0x6c   : > { %892 = vmatpush3.bf16.msra.mxu1 %v891_v63  ;;  %862 = vmatprep.subr.bf16.mxu0 %v861_v0  ;;  %v228_v29 = vld [vmem:[%s1324_s7 + $0x170] sm:$0xff]  ;;  %v229_v31 = vld [vmem:[%s1324_s7 + $0x178] sm:$0xff]  ;;  %v263_v33 = vld [vmem:[%s1324_s7 + $0x288] sm:$0xff]  ;;  %v871_v36 = vpack.c.bf16 %v197_v28, %v196_v27 }
  0x6d   : > { %894 = vmatprep.subr.bf16.mxu1 %v893_v4  ;;  %v294_v34 = vld [vmem:[%s1324_s7 + $0x380] sm:$0xff]  ;;  %v295_v35 = vld [vmem:[%s1324_s7 + $0x388] sm:$0xff]  ;;  %v903_v37 = vpack.c.bf16 %v229_v31, %v228_v29  ;;  %v905_v38 = vpack.c.bf16 %v263_v33, %v262_v32  ;;  %v264_v44 = vld [vmem:[%s1324_s7 + $0x290] sm:$0xff] }
  0x6e   : > { %v246_v39 = vld [vmem:[%s1324_s7 + $0x200] sm:$0xff]  ;;  %v247_v40 = vld [vmem:[%s1324_s7 + $0x208] sm:$0xff]  ;;  %v937_v42 = vpack.c.bf16 %v295_v35, %v294_v34  ;;  %v265_v45 = vld [vmem:[%s1324_s7 + $0x298] sm:$0xff] }
  0x6f   : > { %864 = vmatpush3.bf16.msra.mxu0 %v863_v10  ;;  %v278_v41 = vld [vmem:[%s1324_s7 + $0x300] sm:$0xff]  ;;  %v279_v43 = vld [vmem:[%s1324_s7 + $0x308] sm:$0xff]  ;;  %v296_v46 = vld [vmem:[%s1324_s7 + $0x390] sm:$0xff]  ;;  %v907_v50 = vpack.c.bf16 %v247_v40, %v246_v39  ;;  %v909_v52 = vpack.c.bf16 %v265_v45, %v264_v44 }
  0x70   : > { %896 = vmatpush3.bf16.msra.mxu1 %v895_v13  ;;  %866 = vmatprep.subr.bf16.mxu0 %v865_v14  ;;  %v297_v47 = vld [vmem:[%s1324_s7 + $0x398] sm:$0xff]  ;;  %v174_v48 = vld [vmem:[#allocation2] sm:$0xff]  ;;  %v176_v49 = vld [vmem:[#allocation2 + $0x10] sm:$0xff]  ;;  %v939_v51 = vpack.c.bf16 %v279_v43, %v278_v41 }
  0x71   : > { %898 = vmatprep.subr.bf16.mxu1 %v897_v18  ;;  %v248_v53 = vld [vmem:[%s1324_s7 + $0x210] sm:$0xff]  ;;  %v249_v54 = vld [vmem:[%s1324_s7 + $0x218] sm:$0xff]  ;;  %v941_v56 = vpack.c.bf16 %v297_v47, %v296_v46  ;;  %v266_v58 = vld [vmem:[%s1324_s7 + $0x2a0] sm:$0xff] }
  0x72   : > { %v280_v55 = vld [vmem:[%s1324_s7 + $0x310] sm:$0xff]  ;;  %v281_v57 = vld [vmem:[%s1324_s7 + $0x318] sm:$0xff]  ;;  %v267_v59 = vld [vmem:[%s1324_s7 + $0x2a8] sm:$0xff]  ;;  %v911_v62 = vpack.c.bf16 %v249_v54, %v248_v53 }
  0x73   : > { %868 = vmatpush3.bf16.msra.mxu0 %v867_v24  ;;  %v298_v60 = vld [vmem:[%s1324_s7 + $0x3a0] sm:$0xff]  ;;  %v299_v61 = vld [vmem:[%s1324_s7 + $0x3a8] sm:$0xff]  ;;  %v943_v63 = vpack.c.bf16 %v281_v57, %v280_v55  ;;  %v913_v0 = vpack.c.bf16 %v267_v59, %v266_v58  ;;  %v268_v6 = vld [vmem:[%s1324_s7 + $0x2b0] sm:$0xff] }
  0x74   : > { %900 = vmatpush3.bf16.msra.mxu1 %v899_v25  ;;  %870 = vmatprep.subr.bf16.mxu0 %v869_v26  ;;  %v250_v1 = vld [vmem:[%s1324_s7 + $0x220] sm:$0xff]  ;;  %v251_v2 = vld [vmem:[%s1324_s7 + $0x228] sm:$0xff]  ;;  %v945_v4 = vpack.c.bf16 %v299_v61, %v298_v60  ;;  %v269_v7 = vld [vmem:[%s1324_s7 + $0x2b8] sm:$0xff] }
  0x75   : > { %902 = vmatprep.subr.bf16.mxu1 %v901_v30  ;;  %v282_v3 = vld [vmem:[%s1324_s7 + $0x320] sm:$0xff]  ;;  %v283_v5 = vld [vmem:[%s1324_s7 + $0x328] sm:$0xff]  ;;  %v300_v8 = vld [vmem:[%s1324_s7 + $0x3b0] sm:$0xff]  ;;  %v915_v10 = vpack.c.bf16 %v251_v2, %v250_v1  ;;  %v917_v12 = vpack.c.bf16 %v269_v7, %v268_v6 }
  0x76   : > { %v301_v9 = vld [vmem:[%s1324_s7 + $0x3b8] sm:$0xff]  ;;  %v947_v11 = vpack.c.bf16 %v283_v5, %v282_v3  ;;  %v252_v13 = vld [vmem:[%s1324_s7 + $0x230] sm:$0xff]  ;;  %v270_v18 = vld [vmem:[%s1324_s7 + $0x2c0] sm:$0xff] }
  0x77   : > { %872 = vmatpush3.bf16.msra.mxu0 %v871_v36  ;;  %v253_v14 = vld [vmem:[%s1324_s7 + $0x238] sm:$0xff]  ;;  %v284_v15 = vld [vmem:[%s1324_s7 + $0x330] sm:$0xff]  ;;  %v949_v16 = vpack.c.bf16 %v301_v9, %v300_v8  ;;  %v271_v19 = vld [vmem:[%s1324_s7 + $0x2c8] sm:$0xff] }
  0x78   : > { %904 = vmatpush3.bf16.msra.mxu1 %v903_v37  ;;  %906 = vmatprep.subr.bf16.mxu0 %v905_v38  ;;  %v285_v17 = vld [vmem:[%s1324_s7 + $0x338] sm:$0xff]  ;;  %v302_v20 = vld [vmem:[%s1324_s7 + $0x3c0] sm:$0xff]  ;;  %v303_v21 = vld [vmem:[%s1324_s7 + $0x3c8] sm:$0xff]  ;;  %v919_v22 = vpack.c.bf16 %v253_v14, %v252_v13  ;;  %v921_v26 = vpack.c.bf16 %v271_v19, %v270_v18 }
  0x79   : > { %938 = vmatprep.subr.bf16.mxu1 %v937_v42  ;;  %v179_v23 = vld [vmem:[#allocation2 + $0x28] sm:$0xff]  ;;  %v181_v24 = vld [vmem:[#allocation2 + $0x38] sm:$0xff]  ;;  %v951_v25 = vpack.c.bf16 %v285_v17, %v284_v15  ;;  %v254_v27 = vld [vmem:[%s1324_s7 + $0x240] sm:$0xff]  ;;  %v953_v30 = vpack.c.bf16 %v303_v21, %v302_v20 }
  0x7a   : > { %375 = vmatmul.mubr.f32.vlgmr.msra.gmra.mrb[0].mxu0 %v174_v48  ;;  %v255_v28 = vld [vmem:[%s1324_s7 + $0x248] sm:$0xff]  ;;  %v286_v29 = vld [vmem:[%s1324_s7 + $0x340] sm:$0xff]  ;;  %v272_v32 = vld [vmem:[%s1324_s7 + $0x2d0] sm:$0xff] }
  0x7b   : > { %445 = vmatmul.mubr.f32.vlgmr.msra.gmra.mrb[0].mxu1 %v176_v49  ;;  %908 = vmatpush3.bf16.msra.mxu0 %v907_v50  ;;  %v287_v31 = vld [vmem:[%s1324_s7 + $0x348] sm:$0xff]  ;;  %v273_v33 = vld [vmem:[%s1324_s7 + $0x2d8] sm:$0xff]  ;;  %v304_v34 = vld [vmem:[%s1324_s7 + $0x3d0] sm:$0xff]  ;;  %v923_v36 = vpack.c.bf16 %v255_v28, %v254_v27 }
  0x7c   : > { %940 = vmatpush3.bf16.msra.mxu1 %v939_v51  ;;  %910 = vmatprep.subr.bf16.mxu0 %v909_v52  ;;  %v305_v35 = vld [vmem:[%s1324_s7 + $0x3d8] sm:$0xff]  ;;  %v955_v37 = vpack.c.bf16 %v287_v31, %v286_v29  ;;  %v925_v38 = vpack.c.bf16 %v273_v33, %v272_v32  ;;  %v256_v39 = vld [vmem:[%s1324_s7 + $0x250] sm:$0xff]  ;;  %v274_v44 = vld [vmem:[%s1324_s7 + $0x2e0] sm:$0xff] }
  0x7d   : > { %942 = vmatprep.subr.bf16.mxu1 %v941_v56  ;;  %514 = vmatprep.mubr.f32.mxu0 %v179_v23  ;;  %v257_v40 = vld [vmem:[%s1324_s7 + $0x258] sm:$0xff]  ;;  %v288_v41 = vld [vmem:[%s1324_s7 + $0x350] sm:$0xff]  ;;  %v957_v42 = vpack.c.bf16 %v305_v35, %v304_v34  ;;  %v275_v45 = vld [vmem:[%s1324_s7 + $0x2e8] sm:$0xff] }
  0x7e   : > { %584 = vmatprep.mubr.f32.mxu1 %v181_v24  ;;  %v289_v43 = vld [vmem:[%s1324_s7 + $0x358] sm:$0xff]  ;;  %v306_v46 = vld [vmem:[%s1324_s7 + $0x3e0] sm:$0xff]  ;;  %v307_v47 = vld [vmem:[%s1324_s7 + $0x3e8] sm:$0xff]  ;;  %v927_v48 = vpack.c.bf16 %v257_v40, %v256_v39  ;;  %v929_v50 = vpack.c.bf16 %v275_v45, %v274_v44 }
  0x7f   : > { %912 = vmatpush3.bf16.msra.mxu0 %v911_v62  ;;  %v959_v49 = vpack.c.bf16 %v289_v43, %v288_v41  ;;  %v258_v51 = vld [vmem:[%s1324_s7 + $0x260] sm:$0xff]  ;;  %v259_v52 = vld [vmem:[%s1324_s7 + $0x268] sm:$0xff]  ;;  %v961_v54 = vpack.c.bf16 %v307_v47, %v306_v46  ;;  %v276_v56 = vld [vmem:[%s1324_s7 + $0x2f0] sm:$0xff] }
  0x80   : > { %944 = vmatpush3.bf16.msra.mxu1 %v943_v63  ;;  %914 = vmatprep.subr.bf16.mxu0 %v913_v0  ;;  %v290_v53 = vld [vmem:[%s1324_s7 + $0x360] sm:$0xff]  ;;  %v291_v55 = vld [vmem:[%s1324_s7 + $0x368] sm:$0xff]  ;;  %v277_v57 = vld [vmem:[%s1324_s7 + $0x2f8] sm:$0xff]  ;;  %v931_v60 = vpack.c.bf16 %v259_v52, %v258_v51 }
  0x81   : > { %946 = vmatprep.subr.bf16.mxu1 %v945_v4  ;;  %v308_v58 = vld [vmem:[%s1324_s7 + $0x3f0] sm:$0xff]  ;;  %v309_v59 = vld [vmem:[%s1324_s7 + $0x3f8] sm:$0xff]  ;;  %v963_v61 = vpack.c.bf16 %v291_v55, %v290_v53  ;;  %v933_v62 = vpack.c.bf16 %v277_v57, %v276_v56  ;;  %v178_v6 = vld [vmem:[#allocation2 + $0x20] sm:$0xff] }
  0x82   : > { %v260_v63 = vld [vmem:[%s1324_s7 + $0x270] sm:$0xff]  ;;  %v261_v0 = vld [vmem:[%s1324_s7 + $0x278] sm:$0xff]  ;;  %v965_v1 = vpack.c.bf16 %v309_v59, %v308_v58 }
  0x83   : > { %916 = vmatpush3.bf16.msra.mxu0 %v915_v10  ;;  %v292_v2 = vld [vmem:[%s1324_s7 + $0x370] sm:$0xff]  ;;  %v293_v3 = vld [vmem:[%s1324_s7 + $0x378] sm:$0xff]  ;;  %v935_v4 = vpack.c.bf16 %v261_v0, %v260_v63 }
  0x84   : > { %948 = vmatpush3.bf16.msra.mxu1 %v947_v11  ;;  %918 = vmatprep.subr.bf16.mxu0 %v917_v12  ;;  %v967_v5 = vpack.c.bf16 %v293_v3, %v292_v2  ;;  %v180_v7 = vld [vmem:[#allocation2 + $0x30] sm:$0xff] }
  0x85   : > { %950 = vmatprep.subr.bf16.mxu1 %v949_v16 }
  0x87   : > { %920 = vmatpush3.bf16.msra.mxu0 %v919_v22 }
  0x88   : > { %952 = vmatpush3.bf16.msra.mxu1 %v951_v25  ;;  %922 = vmatprep.subr.bf16.mxu0 %v921_v26 }
  0x89   : > { %954 = vmatprep.subr.bf16.mxu1 %v953_v30 }
  0x8b   : > { %924 = vmatpush3.bf16.msra.mxu0 %v923_v36 }
  0x8c   : > { %956 = vmatpush3.bf16.msra.mxu1 %v955_v37  ;;  %926 = vmatprep.subr.bf16.mxu0 %v925_v38 }
  0x8d   : > { %958 = vmatprep.subr.bf16.mxu1 %v957_v42 }
  0x8f   : > { %928 = vmatpush3.bf16.msra.mxu0 %v927_v48 }
  0x90   : > { %960 = vmatpush3.bf16.msra.mxu1 %v959_v49  ;;  %930 = vmatprep.subr.bf16.mxu0 %v929_v50 }
  0x91   : > { %962 = vmatprep.subr.bf16.mxu1 %v961_v54 }
  0x93   : > { %932 = vmatpush3.bf16.msra.mxu0 %v931_v60 }
  0x94   : > { %964 = vmatpush3.bf16.msra.mxu1 %v963_v61  ;;  %934 = vmatprep.subr.bf16.mxu0 %v933_v62 }
  0x95   : > { %966 = vmatprep.subr.bf16.mxu1 %v965_v1 }
  0x97   : > { %936 = vmatpush3.bf16.msra.mxu0 %v935_v4 }
  0x98   : > { %968 = vmatpush3.bf16.msra.mxu1 %v967_v5 }
  0x9a   : > { %515 = vmatmul.mubr.f32.vlgmr.msra.gmra.mrb[2].mxu0 %v178_v6 }
  0x9b   : > { %585 = vmatmul.mubr.f32.vlgmr.msra.gmra.mrb[2].mxu1 %v180_v7 }
 0x14d   : > { %v733_v8 = vpop.f32.mrb[0].mxu0 }
 0x14e   : > { %v768_v9 = vpop.f32.mrb[0].mxu1  ;;  %v734_v10 = vpop.f32.mrb[1].mxu0 }
 0x14f   : > { %v735_v11 = vadd.f32 %v734_v10, %v733_v8  ;;  %v769_v12 = vpop.f32.mrb[1].mxu1 }
 0x150   : > { %v770_v13 = vadd.f32 %v769_v12, %v768_v9 }
 0x152   : > { %v447_v14 = vadd.f32 %v770_v13, %v735_v11 }
 0x16d   : > { %v803_v15 = vpop.f32.mrb[2].mxu0 }
 0x16e   : > { %v804_v16 = vpop.f32.mrb[3].mxu0  ;;  %v838_v17 = vpop.f32.mrb[2].mxu1 }
 0x16f   : > { %v805_v18 = vadd.f32 %v804_v16, %v803_v15  ;;  %v839_v19 = vpop.f32.mrb[3].mxu1 }
 0x170   : > { %v840_v20 = vadd.f32 %v839_v19, %v838_v17 }
 0x171   : > { %v517_v21 = vadd.f32 %v805_v18, %v447_v14 }
 0x173   : > { %v587_v22 = vadd.f32 %v840_v20, %v517_v21 }
 0x175   : > { %590 = vst [vmem:[%s173_s28] sm:$0xff] %v587_v22 }
 0x176   : > { %1100 = shalt.err (!%p1097_p13)
}
 0x177   : > { %s1101_s19 = scalar_lea.hbm %s1463_s8, 128  ;;  %s1105_s4 = scalar_lea.hbm %s1509_s2, 256 }
 0x178   : > { %p1102_p7 = scmp.ne.s32.totalorder %s1463_s8, %s1101_s19  ;;  %p1106_p1 = scmp.lt.u32.totalorder %s1463_s8, %s1509_s2 }
 0x179   : > { %p1107_p8 = scmp.lt.u32.totalorder %s1105_s4, %s1101_s19  ;;  %p1109_p9 = scmp.lt.u32.totalorder %s1101_s19, %s1463_s8 }
 0x17a   : > { %p1103_p3 = pnand %p1102_p7, %p1528_p10 }
 0x17b   : > { %p1108_p11 = por %p1107_p8, %p1106_p1 }
 0x17c   : > { %p1104_p12 = pneg %p1103_p3 }
 0x17d   : > { %p1110_p2 = por %p1109_p9, %p1108_p11 }
 0x17f   : > { %p1111_p4 = pnand %p1110_p2, %p1104_p12 }
 0x181   : > { %1114 = shalt.err (!%p1111_p4)
}
 0x182   : > { %975 = dma.vmem_to_hbm [thread:$0]  (%p1528_p10), %s1465_s30, 128, %s1463_s8, %s592_s14  }
 0x183 PF: > { %s617_s29 = sand.u32 1, %s1145_s9   ;;  %p1529_p5 = scmp.ne.s32.totalorder %s1518_s22, 0 }
 0x184   : > { %p1530_p0 = scmp.ge.s32.totalorder %s1157_s12, 2  ;;  %s618_s7 = scalar_lea.sflag [#allocation4], %s617_s29 }
 0x186   : > { %p986_p6 = pnand %p1530_p0, %p1529_p5 }
 0x188   : > { %1140 = dma.done.wait (!%p986_p6), %s618_s7, 128  }
 0x189   : > { %1142 = vsyncadd (!%p986_p6), %s618_s7, 4294967168  ;;  %p16_p13 = scmp.ge.s32.totalorder %s1205_s15, 4   ;;  %s1531_s9 = smov %s1149_s10 }
 0x18a   : > { %s1532_s10 = smov %s1153_s11  ;;  %s1533_s11 = smov %s1217_s18 }
 0x18b   : > { %s1534_s12 = smov %s1205_s15  ;;  %18 = sbr.rel (!%p16_p13) target bundleno = 6 (0x6), region = 78 }
 0x192   :  { %623 = vsyncpa [#allocation3], 1 }
 0x193   :  { %625 = vsyncpa [#allocation3 + $0x1], 1 }
 0x194   :  { %626 = vsyncpa [#allocation6], 1 }
 0x195   :  { %628 = vsyncpa [#allocation6 + $0x1], 1 }
 0x196   :  { %629 = vsyncpa [#allocation4], 1 }
 0x197   :  { %631 = vsyncpa [#allocation4 + $0x1], 1 }

</bundles_post_ra>
